<compile_context>
chip_gen: v5e
topology: v5e:2x2
jax: 0.10.0
libtpu: 0.0.40
codegen_flags: <defaults>
</compile_context>

<pallas_src>
import functools

import jax
import jax.numpy as jnp
from jax.experimental import pallas as pl
from jax.experimental.pallas import tpu as pltpu


def _round_up(x, m):
    return ((x + m - 1) // m) * m


def _focal_loss_kernel(logits_ref, tgt_ref, out_ref, *, alpha, gamma,
                       ignore_index, hw, tp):
    i = pl.program_id(1)  # pixel-tile index

    logits = logits_ref[...].astype(jnp.float32)   # (C, TP) classes on sublanes
    tgt = tgt_ref[...].astype(jnp.int32)           # (1, TP)

    # Validity: real pixel (tail of a partial last tile is garbage) AND not ignored.
    lane = jax.lax.broadcasted_iota(jnp.int32, tgt.shape, 1)       # (1, TP)
    pix_ok = (i * tp + lane) < hw
    valid = jnp.logical_and(pix_ok, tgt != ignore_index)

    # Numerically-stable log-sum-exp over the class (sublane) axis.
    m = jnp.max(logits, axis=0, keepdims=True)                     # (1, TP)
    e = jnp.exp(logits - m)                                        # (C, TP)
    sumexp = jnp.sum(e, axis=0, keepdims=True)                     # (1, TP)
    lse = m + jnp.log(sumexp)

    # Target-class gather via a sublane-iota one-hot compare.
    class_ids = jax.lax.broadcasted_iota(jnp.int32, logits.shape, 0)
    onehot = class_ids == tgt                                      # (C, TP)
    tgt_logit = jnp.sum(jnp.where(onehot, logits, 0.0), axis=0, keepdims=True)

    ce = jnp.maximum(lse - tgt_logit, 0.0)                         # (1, TP)

    # Trace-time specialization of the focal weight.
    if gamma == 0.0:
        focal = alpha * ce                       # (1-pt)**0 == 1: no extra EUP work
    else:
        # Reuse exp(logits - m): pt = softmax prob of the target class.
        tgt_exp = jnp.sum(jnp.where(onehot, e, 0.0), axis=0, keepdims=True)
        pt = tgt_exp / sumexp
        w = jnp.maximum(1.0 - pt, 0.0)           # clamp rounding noise before **
        if float(gamma).is_integer() and gamma > 0:
            wg = w
            for _ in range(int(gamma) - 1):
                wg = wg * w
        else:
            wg = w ** gamma
        focal = alpha * wg * ce

    # Mask LAST so NaN/Inf from garbage tail lanes or ignored pixels never leak.
    focal = jnp.where(valid, focal, 0.0)

    # Per-tile partial sum: single (1,1) store, no resident accumulator.
    out_ref[...] = jnp.sum(focal, axis=-1, keepdims=True)


def focal_loss(inputs, targets, *, alpha=1.0, gamma=0.0, size_average=True,
               ignore_index=255, tile_pixels=None):
    """inputs: (N, C, H, W) float logits; targets: (N, H, W) integer labels."""
    n, c, h, w = inputs.shape
    hw = h * w

    # Free reshapes (contiguous): no transpose, no pad, no extra HBM pass.
    logits = inputs.reshape(n, c, hw)
    tgt = targets.reshape(n, 1, hw)   # keep caller dtype; cast in-kernel

    in_item = jnp.dtype(inputs.dtype).itemsize
    tgt_item = jnp.dtype(targets.dtype).itemsize

    # Sublane-padded VMEM bytes per pixel column (each lane column of a VMEM
    # tile is 32 B regardless of dtype: (8,128) f32 / (16,128) bf16 / ...).
    logits_bpp = _round_up(c * in_item, 32)
    tgt_bpp = _round_up(1 * tgt_item, 32)

    if tile_pixels is None:
        # ~2 MiB of *actual* logits bytes per block: amortizes the ~0.35 us
        # per-grid-step overhead on v6e/v7x while staying past v5e's roofline knee.
        tile_pixels = (2 * 1024 * 1024) // max(1, c * in_item)

    # Cap so the double-buffered pipeline (2x logits + 2x targets blocks,
    # sublane-padded) stays under ~28 MiB -> safe on v7x's 64 MiB VMEM too.
    vmem_budget = 28 * 1024 * 1024
    tp_cap = vmem_budget // (2 * (logits_bpp + tgt_bpp))
    hw_floor = max(128, (hw // 128) * 128)   # largest 128-multiple <= hw (>=128)
    tp = min(int(tile_pixels), int(tp_cap), hw_floor)
    tp = max(128, (tp // 128) * 128)

    num_tiles = int(pl.cdiv(hw, tp))
    pipeline_bytes = 2 * (logits_bpp + tgt_bpp) * tp
    vmem_limit = int(pipeline_bytes + (8 << 20))   # headroom: out blocks + scratch

    kernel = functools.partial(
        _focal_loss_kernel, alpha=float(alpha), gamma=float(gamma),
        ignore_index=int(ignore_index), hw=int(hw), tp=int(tp))

    partials = pl.pallas_call(
        kernel,
        out_shape=jax.ShapeDtypeStruct((n, num_tiles, 1, 1), jnp.float32),
        grid_spec=pltpu.PrefetchScalarGridSpec(
            num_scalar_prefetch=0,
            grid=(n, num_tiles),
            in_specs=[
                pl.BlockSpec((None, c, tp), lambda b, i: (b, 0, i)),
                pl.BlockSpec((None, 1, tp), lambda b, i: (b, 0, i)),
            ],
            out_specs=pl.BlockSpec((None, None, 1, 1), lambda b, i: (b, i, 0, 0)),
        ),
        compiler_params=pltpu.CompilerParams(
            dimension_semantics=("parallel", "parallel"),
            vmem_limit_bytes=vmem_limit),
    )(logits, tgt)

    total = jnp.sum(partials)
    if size_average:
        # torch: F.cross_entropy(reduction='none') then .mean() -> divide by the
        # total element count, ignored pixels included.
        return total / jnp.float32(n * hw)
    return total


if __name__ == "__main__":
    key = jax.random.PRNGKey(0)
    k_logits, k_tgt, k_ign, k2_logits, k2_tgt, k2_ign = jax.random.split(key, 6)

    def reference(inputs, targets, *, alpha, gamma, size_average, ignore_index=255):
        logp = jax.nn.log_softmax(jnp.transpose(inputs, (0, 2, 3, 1)), axis=-1)
        tgt_safe = jnp.where(targets == ignore_index, 0, targets)
        ce = -jnp.take_along_axis(logp, tgt_safe[..., None], axis=-1)[..., 0]
        ce = jnp.where(targets == ignore_index, 0.0, ce)
        pt = jnp.exp(-ce)
        fl = alpha * (1.0 - pt) ** gamma * ce
        return jnp.mean(fl) if size_average else jnp.sum(fl)

    # --- case 1: module defaults (alpha=1, gamma=0, mean), N=2, C=4, 16x16 ---
    N, C, H, W = 2, 4, 16, 16
    inputs = jax.random.normal(k_logits, (N, C, H, W), dtype=jnp.float32)
    targets = jax.random.randint(k_tgt, (N, H, W), 0, C, dtype=jnp.int32)
    targets = jnp.where(jax.random.bernoulli(k_ign, 0.1, (N, H, W)), 255, targets)

    loss0 = focal_loss(inputs, targets, alpha=1.0, gamma=0.0, size_average=True)
    jax.block_until_ready(loss0)
    ref0 = reference(inputs, targets, alpha=1.0, gamma=0.0, size_average=True)
    assert jnp.allclose(loss0, ref0, rtol=1e-5, atol=1e-5), (loss0, ref0)

    # --- case 2: gamma=2 (integer fast path + pt reuse), sum reduction ---
    loss2 = focal_loss(inputs, targets, alpha=0.5, gamma=2.0, size_average=False)
    jax.block_until_ready(loss2)
    ref2 = reference(inputs, targets, alpha=0.5, gamma=2.0, size_average=False)
    assert jnp.allclose(loss2, ref2, rtol=1e-4, atol=1e-4), (loss2, ref2)

    # --- case 3: non-128-multiple spatial size exercises the partial-tile mask ---
    N3, C3, H3, W3 = 1, 3, 10, 13
    in3 = jax.random.normal(k2_logits, (N3, C3, H3, W3), dtype=jnp.float32)
    tg3 = jax.random.randint(k2_tgt, (N3, H3, W3), 0, C3, dtype=jnp.int32)
    tg3 = jnp.where(jax.random.bernoulli(k2_ign, 0.15, (N3, H3, W3)), 255, tg3)
    loss3 = focal_loss(in3, tg3, alpha=1.0, gamma=2.0, size_average=True)
    jax.block_until_ready(loss3)
    ref3 = reference(in3, tg3, alpha=1.0, gamma=2.0, size_average=True)
    assert jnp.allclose(loss3, ref3, rtol=1e-4, atol=1e-4), (loss3, ref3)

    print("KERNEL_OK")
</pallas_src>

<mosaic_0001>
module attributes {stable_mosaic.version = 11 : i64} {
  func.func @_focal_loss_kernel(%arg0: i32, %arg1: i32, %arg2: memref<1x4x256xf32, #tpu.memory_space<vmem>>, %arg3: memref<1x1x256xi32, #tpu.memory_space<vmem>>, %arg4: memref<1x1x1x1xf32, #tpu.memory_space<vmem>>) attributes {dimension_semantics = [#tpu.dimension_semantics<parallel>, #tpu.dimension_semantics<parallel>], iteration_bounds = array<i64: 2, 1>, scalar_prefetch = 0 : i64, scratch_operands = 0 : i64, tpu.core_type = #tpu.core_type<tc>, window_params = [{transform_indices = @transform_0, window_bounds = array<i64: 1, 4, 256>}, {transform_indices = @transform_1, window_bounds = array<i64: 1, 1, 256>}, {transform_indices = @transform_2, window_bounds = array<i64: 1, 1, 1, 1>}]} {
    %c0 = arith.constant 0 : index
    %c0_0 = arith.constant 0 : index
    %c0_1 = arith.constant 0 : index
    %0 = vector.load %arg2[%c0, %c0_0, %c0_1] : memref<1x4x256xf32, #tpu.memory_space<vmem>>, vector<1x4x256xf32>
    %1 = vector.shape_cast %0 : vector<1x4x256xf32> to vector<4x256xf32>
    %c0_2 = arith.constant 0 : index
    %c0_3 = arith.constant 0 : index
    %c0_4 = arith.constant 0 : index
    %2 = vector.load %arg3[%c0_2, %c0_3, %c0_4] : memref<1x1x256xi32, #tpu.memory_space<vmem>>, vector<1x1x256xi32>
    %3 = vector.shape_cast %2 : vector<1x1x256xi32> to vector<1x256xi32>
    %4 = tpu.iota {dimensions = array<i32: 1>} : vector<1x256xi32>
    %c256_i32 = arith.constant 256 : i32
    %5 = arith.muli %arg1, %c256_i32 : i32
    %6 = vector.broadcast %5 : i32 to vector<1x256xi32>
    %7 = arith.addi %6, %4 : vector<1x256xi32>
    %c256_i32_5 = arith.constant 256 : i32
    %8 = vector.broadcast %c256_i32_5 : i32 to vector<1x256xi32>
    %9 = arith.cmpi slt, %7, %8 : vector<1x256xi32>
    %c255_i32 = arith.constant 255 : i32
    %10 = vector.broadcast %c255_i32 : i32 to vector<1x256xi32>
    %11 = arith.cmpi ne, %3, %10 : vector<1x256xi32>
    %12 = arith.andi %9, %11 : vector<1x256xi1>
    %cst = arith.constant dense<0xFF800000> : vector<256xf32>
    %13 = vector.multi_reduction <maximumf>, %1, %cst [0] : vector<4x256xf32> to vector<256xf32>
    %14 = vector.shape_cast %13 : vector<256xf32> to vector<1x256xf32>
    %15 = vector.broadcast %14 : vector<1x256xf32> to vector<4x256xf32>
    %16 = arith.subf %1, %15 : vector<4x256xf32>
    %17 = math.exp %16 : vector<4x256xf32>
    %cst_6 = arith.constant dense<0.000000e+00> : vector<256xf32>
    %18 = vector.multi_reduction <add>, %17, %cst_6 [0] : vector<4x256xf32> to vector<256xf32>
    %19 = vector.shape_cast %18 : vector<256xf32> to vector<1x256xf32>
    %20 = math.log %19 : vector<1x256xf32>
    %21 = arith.addf %14, %20 : vector<1x256xf32>
    %22 = tpu.iota {dimensions = array<i32: 0>} : vector<4x256xi32>
    %23 = vector.broadcast %3 : vector<1x256xi32> to vector<4x256xi32>
    %24 = arith.cmpi eq, %22, %23 : vector<4x256xi32>
    %cst_7 = arith.constant 0.000000e+00 : f32
    %25 = vector.broadcast %cst_7 : f32 to vector<4x256xf32>
    %26 = arith.select %24, %1, %25 : vector<4x256xi1>, vector<4x256xf32>
    %cst_8 = arith.constant dense<0.000000e+00> : vector<256xf32>
    %27 = vector.multi_reduction <add>, %26, %cst_8 [0] : vector<4x256xf32> to vector<256xf32>
    %28 = vector.shape_cast %27 : vector<256xf32> to vector<1x256xf32>
    %29 = arith.subf %21, %28 : vector<1x256xf32>
    %cst_9 = arith.constant 0.000000e+00 : f32
    %30 = vector.broadcast %cst_9 : f32 to vector<1x256xf32>
    %31 = arith.maximumf %29, %30 : vector<1x256xf32>
    %cst_10 = arith.constant 1.000000e+00 : f32
    %32 = vector.broadcast %cst_10 : f32 to vector<1x256xf32>
    %33 = arith.mulf %32, %31 : vector<1x256xf32>
    %cst_11 = arith.constant 0.000000e+00 : f32
    %34 = vector.broadcast %cst_11 : f32 to vector<1x256xf32>
    %35 = arith.select %12, %33, %34 : vector<1x256xi1>, vector<1x256xf32>
    %cst_12 = arith.constant dense<0.000000e+00> : vector<1xf32>
    %36 = vector.multi_reduction <add>, %35, %cst_12 [1] : vector<1x256xf32> to vector<1xf32>
    %37 = vector.shape_cast %36 : vector<1xf32> to vector<1x1xf32>
    %c0_13 = arith.constant 0 : index
    %c0_14 = arith.constant 0 : index
    %c0_15 = arith.constant 0 : index
    %c0_16 = arith.constant 0 : index
    %38 = vector.load %arg4[%c0_13, %c0_14, %c0_15, %c0_16] : memref<1x1x1x1xf32, #tpu.memory_space<vmem>>, vector<1x1x1x1xf32>
    %39 = vector.shape_cast %38 : vector<1x1x1x1xf32> to vector<1x1xf32>
    %40 = vector.shape_cast %37 : vector<1x1xf32> to vector<1x1x1x1xf32>
    tpu.vector_store %arg4[%c0_13, %c0_14, %c0_15, %c0_16], %40 {strides = array<i32>} : memref<1x1x1x1xf32, #tpu.memory_space<vmem>>, vector<1x1x1x1xf32>,
    return
  }
  func.func @transform_0(%arg0: i32, %arg1: i32) -> (i32, i32, i32) {
    %c0_i32 = arith.constant 0 : i32
    %c0_i32_0 = arith.constant 0 : i32
    return %arg0, %c0_i32, %arg1 : i32, i32, i32
  }
  func.func @transform_1(%arg0: i32, %arg1: i32) -> (i32, i32, i32) {
    %c0_i32 = arith.constant 0 : i32
    %c0_i32_0 = arith.constant 0 : i32
    return %arg0, %c0_i32, %arg1 : i32, i32, i32
  }
  func.func @transform_2(%arg0: i32, %arg1: i32) -> (i32, i32, i32, i32) {
    %c0_i32 = arith.constant 0 : i32
    %c0_i32_0 = arith.constant 0 : i32
    %c0_i32_1 = arith.constant 0 : i32
    return %arg0, %arg1, %c0_i32, %c0_i32_0 : i32, i32, i32, i32
  }
}

</mosaic_0001>

<bundles_post_ra>
// kernel: tpu_custom_call.1
= control target key start
LH: loop header
LB: loop body
LE: loop exit
PB: predicated region body
PF: predicated region fallthrough
CT: control target
= control target key end

     0   :  { %7 = vsyncpa [#allocation3], 0  ;;  %s774_s0 = inlined_call_operand.hbm [shape: f32[2,4,256], index: 0, kind: input, shape index: {}]   ;;  %s775_s1 = inlined_call_operand.hbm [shape: s32[2,1,256], index: 1, kind: input, shape index: {}]   ;;  %s776_s2 = inlined_call_operand.vmem [shape: f32[2,1,1,1], index: 2, kind: output, shape index: {}]  }
   0x1   :  { %9 = vsyncpa [#allocation3 + $0x1], 0 }
   0x2   :  { %10 = vsyncpa [#allocation5], 0 }
   0x3   :  { %12 = vsyncpa [#allocation5 + $0x1], 0  ;;  %s663_s9 = smov 0   ;;  %s665_s10 = smov 0  }
   0x4   :  { %s667_s11 = smov 0   ;;  %s669_s12 = smov 0  }
   0x5   :  { %s671_s13 = smov 0   ;;  %s673_s14 = smov 0  }
   0x6 LB: > { %s449_s15 = sadd.s32 4294967295, %s645_s14   ;;  %s30_s16 = sadd.s32 1, %s641_s13  ;;  %s645_s14 = sphi %s673_s14, %s18_s14   ;;  %s641_s13 = sphi %s671_s13, %s784_s13   ;;  %s637_s12 = sphi %s669_s12, %s783_s12   ;;  %s633_s11 = sphi %s667_s11, %s782_s11   ;;  %s629_s10 = sphi %s665_s10, %s781_s10   ;;  %s625_s9 = sphi %s663_s9, %s780_s9  }
   0x7   : > { %p32_p0 = scmp.ge.s32.totalorder %s30_s16, 2  ;;  %s39_s17 = sadd.s32 1, %s633_s11 }
   0x8   : > { %p46_p1 = scmp.ne.s32.totalorder %s633_s11, %s629_s10  ;;  %p47_p2 = scmp.eq.s32.totalorder %s645_s14, 0 }
   0x9   : > { %s786_s16 = smov (%p32_p0, %s30_s16), 0  ;;  %p52_p4 = scmp.ne.s32.totalorder %s629_s10, %s625_s9 }
   0xa   : > { %p699_p3 = por %p47_p2, %p46_p1  ;;  %s34_s19 = ssub.s32 %s641_s13, %s786_s16 }
   0xb   : > { %p53_p5 = scmp.eq.s32.totalorder %s449_s15, 0  ;;  %p37_p6 = scmp.eq.s32.totalorder %s34_s19, 0 }
   0xc   : > { %p475_p8 = scmp.lt.s32.totalorder %s645_s14, 2  ;;  %s132_s22 = sand.u32 1, %s633_s11  }
   0xd   : > { %p706_p7 = por %p53_p5, %p52_p4  ;;  %s463_s23 = sshll.u32 %s641_s13, 3 }
   0xe   : > { %s712_s21 = scalar_select %p37_p6, %s633_s11, %s39_s17  }
   0xf   : > { %s453_s24 = sshll.u32 %s132_s22, 3  ;;  %s143_s27 = scalar_lea.hbm %s774_s0, %s463_s23 }
  0x10   : > { %s145_s28 = sshll.u32 %s143_s27, 4  ;;  %s136_s29 = scalar_lea.vmem [#allocation2], %s453_s24  ;;  %s146_s28 = int_to_ptr.hbm [resolvable:$true] %s145_s28 }
  0x11   : > { %s147_s30 = sshll.u32 %s136_s29, 4  ;;  %p721_p9 = pnand %p475_p8, %p699_p3  ;;  %s148_s30 = int_to_ptr.vmem [resolvable:$true] %s147_s30 }
  0x12   : > { %p458_p10 = scmp.ge.s32.totalorder %s645_s14, 1  ;;  %p173_p11 = scmp.lt.s32.totalorder %s645_s14, 3 }
  0x13   : > { %s456_s4 = sshll.u32 %s132_s22, 1  ;;  %s133_s5 = scalar_lea.sflag [#allocation3], %s132_s22 }
  0x14   : > { %471 = dma.hbm_to_vmem [thread:$0]  (!%p721_p9), %s146_s28, 128, %s148_s30, %s133_s5  }
  0x15   : > { %p174_p12 = pnand %p458_p10, %p173_p11  ;;  %s457_s6 = sshll.u32 %s641_s13, 1 }
  0x16   : > { %s158_s7 = scalar_lea.vmem [#allocation4], %s456_s4  ;;  %s164_s17 = scalar_lea.hbm %s775_s1, %s457_s6 }
  0x17   : > { %s168_s8 = sshll.u32 %s158_s7, 4  ;;  %s166_s18 = sshll.u32 %s164_s17, 4  ;;  %s169_s8 = int_to_ptr.vmem [resolvable:$true] %s168_s8  ;;  %s167_s18 = int_to_ptr.hbm [resolvable:$true] %s166_s18 }
  0x18   : > { %s155_s19 = scalar_lea.sflag [#allocation5], %s132_s22  ;;  %177 = sbr.rel (%p174_p12) target bundleno = 227 (0xe3), region = 28 }
  0x19   : > { %474 = dma.hbm_to_vmem [thread:$0]  (!%p721_p9), %s167_s18, 32, %s169_s8, %s155_s19  }
  0x1a   : > { %s179_s23 = sand.u32 (!%p174_p12), 1, %s629_s10  }
  0x1b   : > { %s459_s24 = sshll.u32 (!%p174_p12), %s179_s23, 3  ;;  %s180_s25 = scalar_lea.sflag (!%p174_p12), [#allocation3], %s179_s23 }
  0x1c   : > { %s183_s26 = scalar_lea.vmem (!%p174_p12), [#allocation2], %s459_s24 }
  0x1d   : > { %616 = dma.done.wait (%p706_p7), %s180_s25, 128  }
  0x1e   : > { %618 = vsyncadd (%p706_p7), %s180_s25, 4294967168  ;;  %s460_s27 = sshll.u32 %s179_s23, 1  ;;  %s190_s28 = scalar_lea.sflag [#allocation5], %s179_s23 }
  0x1f   : > { %s193_s29 = scalar_lea.vmem [#allocation4], %s460_s27 }
  0x20   : > { %620 = dma.done.wait (%p706_p7), %s190_s28, 32  }
  0x21   : > { %622 = vsyncadd (%p706_p7), %s190_s28, 4294967264  ;;  %v229_v0 = vld [vmem:[%s183_s26] sm:$0xff]  ;;  %vm254_vm0 = vcmask 1043456   ;;  %v303_v22 = vlaneseq  ;;  %v230_v23 = vld [vmem:[%s193_s29] sm:$0x3]  ;;  %v647_v57 = vmov 0  }
  0x22   : > { %249 = vst [vmem:[#allocation1] ss:$2 sm:$0xff] %v229_v0  ;;  %v305_v31 = vperm.slane %v230_v23, 0  ;;  %v306_v32 = vperm.slane %v230_v23, 1  ;;  %vm240_vm3 = vcmp.ne.s32.totalorder %v230_v23, 255  ;;  %vm336_vm6 = vcmask 1040384  }
  0x23   : > { %v304_v28 = vshrl.u32 %v303_v22, 7  ;;  %v241_v58 = vsel %vm240_vm3, 1, %v647_v57  ;;  %p223_p13 = scmp.lt.s32.totalorder %s637_s12, 1  ;;  %vm342_vm7 = vcmask 0  }
  0x25   : > { %vm307_vm1 = vcmp.eq.s32.totalorder %v304_v28, %v305_v31  ;;  %vm308_vm2 = vcmp.eq.s32.totalorder %v304_v28, %v306_v32  ;;  %s788_s12 = smov (!%p223_p13, %s637_s12), 1 }
  0x26   : > { %s228_s30 = scalar_lea.vmem %s776_s2, %s788_s12 }
  0x29   : > { %v250_v1 = vld.sshfl [vmem:[#allocation1] sm:$0xff pattern:$0x75316420]  ;;  %v251_v2 = vld.sshfl [vmem:[#allocation1 + $0x8] sm:$0xff pattern:$0x75316420] }
  0x2a   : > { %v255_v3 = vsel %vm254_vm0, %v250_v1, -inf  ;;  %v262_v4 = vsel %vm254_vm0, %v251_v2, -inf  ;;  %v242_v1 = vperm.slane %v241_v58, 0 }
  0x2b   : > { %v256_v5 = vrot.slane %v255_v3, 4  ;;  %v263_v6 = vrot.slane %v262_v4, 4 }
  0x2c   : > { %vm244_vm4 = vcmp.ne.s32.totalorder %v242_v1, 0 }
  0x2d   : > { %v257_v7 = vmax.f32 %v255_v3, %v256_v5  ;;  %v264_v8 = vmax.f32 %v262_v4, %v263_v6  ;;  %v243_v4 = vperm.slane %v241_v58, 1 }
  0x2f   : > { %v258_v9 = vrot.slane %v257_v7, 2  ;;  %v265_v10 = vrot.slane %v264_v8, 2  ;;  %vm245_vm5 = vcmp.ne.s32.totalorder %v243_v4, 0 }
  0x31   : > { %v259_v11 = vmax.f32 %v257_v7, %v258_v9  ;;  %v266_v12 = vmax.f32 %v264_v8, %v265_v10 }
  0x33   : > { %v260_v13 = vrot.slane %v259_v11, 1  ;;  %v267_v14 = vrot.slane %v266_v12, 1 }
  0x35   : > { %v261_v15 = vmax.f32 %v259_v11, %v260_v13  ;;  %v268_v16 = vmax.f32 %v266_v12, %v267_v14 }
  0x37   : > { %v271_v17 = vrot.slane %v268_v16, 4 }
  0x39   : > { %v272_v18 = vsel %vm254_vm0, %v261_v15, %v271_v17 }
  0x3a   : > { %v274_v19 = vsub.f32 %v229_v0, %v272_v18 }
  0x3c   : > { %v275_v20 = vmul.f32 1.442695, %v274_v19 }
  0x3e   : > { %525 = vpow2.f32 %v275_v20 }
  0x44   : > { %v526_v21 = vpop.eup %525 }
  0x45   : > { %278 = vst [vmem:[#allocation1] ss:$2 sm:$0xff] %v526_v21 }
  0x4c   : > { %v279_v24 = vld.sshfl [vmem:[#allocation1] sm:$0xff pattern:$0x75316420]  ;;  %v280_v25 = vld.sshfl [vmem:[#allocation1 + $0x8] sm:$0xff pattern:$0x75316420] }
  0x4d   : > { %v283_v26 = vsel %vm254_vm0, %v279_v24, 0.0  ;;  %v290_v27 = vsel %vm254_vm0, %v280_v25, 0.0  ;;  %309 = vst [vmem:[#allocation1] ss:$2 sm:$0xff] %v229_v0 }
  0x4e   : > { %v284_v29 = vrot.slane %v283_v26, 4  ;;  %v291_v30 = vrot.slane %v290_v27, 4 }
  0x50   : > { %v285_v33 = vadd.f32 %v284_v29, %v283_v26  ;;  %v292_v34 = vadd.f32 %v291_v30, %v290_v27 }
  0x52   : > { %v286_v35 = vrot.slane %v285_v33, 2  ;;  %v293_v36 = vrot.slane %v292_v34, 2 }
  0x54   : > { %v287_v37 = vadd.f32 %v286_v35, %v285_v33  ;;  %v294_v38 = vadd.f32 %v293_v36, %v292_v34  ;;  %v310_v39 = vld.sshfl [vmem:[#allocation1] sm:$0xff pattern:$0x75316420]  ;;  %v311_v40 = vld.sshfl [vmem:[#allocation1 + $0x8] sm:$0xff pattern:$0x75316420] }
  0x55   : > { %v314_v41 = vsel %vm307_vm1, %v310_v39, 0.0  ;;  %v315_v42 = vsel %vm308_vm2, %v311_v40, 0.0 }
  0x56   : > { %v288_v43 = vrot.slane %v287_v37, 1  ;;  %v295_v44 = vrot.slane %v294_v38, 1  ;;  %v316_v45 = vsel %vm254_vm0, %v314_v41, 0.0  ;;  %v323_v46 = vsel %vm254_vm0, %v315_v42, 0.0 }
  0x57   : > { %v317_v47 = vrot.slane %v316_v45, 4  ;;  %v324_v48 = vrot.slane %v323_v46, 4 }
  0x58   : > { %v289_v49 = vadd.f32 %v288_v43, %v287_v37  ;;  %v296_v50 = vadd.f32 %v295_v44, %v294_v38 }
  0x59   : > { %v318_v51 = vadd.f32 %v317_v47, %v316_v45  ;;  %v325_v52 = vadd.f32 %v324_v48, %v323_v46 }
  0x5a   : > { %527 = vlog2.f32 %v289_v49 }
  0x5b   : > { %529 = vlog2.f32 %v296_v50  ;;  %v319_v53 = vrot.slane %v318_v51, 2  ;;  %v326_v54 = vrot.slane %v325_v52, 2 }
  0x5d   : > { %v320_v55 = vadd.f32 %v319_v53, %v318_v51  ;;  %v327_v56 = vadd.f32 %v326_v54, %v325_v52 }
  0x5f   : > { %v321_v59 = vrot.slane %v320_v55, 1  ;;  %v328_v60 = vrot.slane %v327_v56, 1 }
  0x60   : > { %v528_v61 = vpop.eup %527 }
  0x61   : > { %v530_v62 = vpop.eup %529  ;;  %v298_v63 = vmul.f32 0.6931472, %v528_v61  ;;  %v322_v0 = vadd.f32 %v321_v59, %v320_v55  ;;  %v329_v3 = vadd.f32 %v328_v60, %v327_v56 }
  0x62   : > { %v300_v2 = vmul.f32 0.6931472, %v530_v62 }
  0x63   : > { %v301_v5 = vadd.f32 %v298_v63, %v261_v15 }
  0x64   : > { %v302_v6 = vadd.f32 %v300_v2, %v268_v16 }
  0x65   : > { %v330_v7 = vsub.f32 %v301_v5, %v322_v0 }
  0x66   : > { %v331_v8 = vsub.f32 %v302_v6, %v329_v3 }
  0x67   : > { %v332_v9 = vmax.f32 %v330_v7, 0.0 }
  0x68   : > { %v333_v10 = vmax.f32 %v331_v8, 0.0 }
  0x69   : > { %v334_v11 = vsel %vm244_vm4, %v332_v9, 0.0 }
  0x6a   : > { %v335_v12 = vsel %vm245_vm5, %v333_v10, 0.0  ;;  %v337_v13 = vsel %vm336_vm6, %v334_v11, 0.0 }
  0x6b   : > { %v338_v14 = vsel %vm336_vm6, %v335_v12, 0.0 }
  0x6c   : > { %v339_v17 = vadd.f32 %v338_v14, %v337_v13 }
  0x6e   : > { %340 = vadd.xlane.f32.xlu0 %v339_v17 }
  0xe1   : > { %v341_v15 = vpop.xlane.xlu0 %340 }
  0xe2   : > { %343 = vst.msk [vmem:[%s228_s30] sm:$0x1] %vm342_vm7, %v341_v15 }
  0xe3 PF: > { %s18_s14 = sadd.s32 1, %s645_s14   ;;  %s780_s9 = smov %s629_s10 }
  0xe4   : > { %p15_p0 = scmp.ge.s32.totalorder %s18_s14, 4   ;;  %s781_s10 = smov %s633_s11 }
  0xe5   : > { %s782_s11 = smov %s712_s21  ;;  %s783_s12 = smov %s641_s13 }
  0xe6   : > { %s784_s13 = smov %s786_s16  ;;  %17 = sbr.rel (!%p15_p0) target bundleno = 6 (0x6), region = 81 }
  0xeb   :  { %367 = vsyncpa [#allocation3], 1 }
  0xec   :  { %369 = vsyncpa [#allocation3 + $0x1], 1 }
  0xed   :  { %370 = vsyncpa [#allocation5], 1 }
  0xee   :  { %372 = vsyncpa [#allocation5 + $0x1], 1 }

</bundles_post_ra>
